<compile_context>
chip_gen: v6e
topology: v6e:2x2x1
jax: 0.10.0
libtpu: 0.0.40
codegen_flags: <defaults>
</compile_context>

<pallas_src>
import numpy as np
import jax
import jax.numpy as jnp
from jax.experimental import pallas as pl
from jax.experimental.pallas import tpu as pltpu

# ---- model hyper-parameters (the `args` of Classifier3) -------------------
NI       = 4            # args.ni        : number of input time-series features
WINDOW   = 16           # args.window    : sequence length
CONV_OUT = 16           # args.conv[0]   : pointwise output features
K        = 3            # args.conv[1]   : depthwise kernel size
STRIDE   = 1            # args.conv[2]
PAD      = 1            # args.conv[3]
NSI      = 32           # args.nsi       : stat-branch input features
NSO      = 16           # args.nso       : stat-branch output features

L_OUT         = (WINDOW - K + 2 * PAD + STRIDE) // STRIDE   # depthwise conv output length
CONV_OUT_SIZE = NI * L_OUT                                  # flattened depthwise output
RAW_IN        = NI * WINDOW                                 # flattened ts (row-major (w, c))
HID_STAT      = 512
HID_OUT       = 64
N_OUT         = 8
OUT_PAD       = 128      # lane-dense output width (logits live in lanes 0..7)

CHUNK    = 128           # stat-branch HID_STAT chunk (4 chunks, unrolled)
N_CHUNKS = HID_STAT // CHUNK

BF16_MAX = float(jnp.finfo(jnp.bfloat16).max)

# ---- bf16 weight slab layout (row offsets 16-aligned for bf16 sublane packing) ----
R_WRAW = 0                            # folded raw-branch weight  (RAW_IN, CONV_OUT)
R_WO1R = 64                           # out-head W1, raw rows     (CONV_OUT, HID_OUT)
R_WO1S = 80                           # out-head W1, stat rows    (NSO, HID_OUT)
R_WO2  = 96                           # out-head W2 (zero-padded) (HID_OUT, OUT_PAD)
W_SLAB_ROWS = 160

# ---- f32 bias slab layout (row offsets 8-aligned; 512 lanes wide) -----------------
RB_S1  = 0                            # stat-branch b1  (HID_STAT,)
RB_RAW = 8                            # folded raw bias (CONV_OUT,)
RB_O1  = 16                           # out-head b1     (HID_OUT,)
RB_O2  = 24                           # out-head b2     (N_OUT, zero-padded to OUT_PAD)
RB_S2  = 32                           # stat-branch b2  (NSO,)
B_SLAB_ROWS = 40


def _round_up(x, m):
    return (x + m - 1) // m * m


# ---- the Pallas kernel (one batch tile per grid step) ----------------------
def classifier3_kernel(ts_ref, stat_ref, ws1_ref, ws2_ref, wslab_ref, bslab_ref, out_ref):
    f32, bf16 = jnp.float32, jnp.bfloat16

    # nan->0; +/-inf clamped to the bf16-finite range so the bf16 cast stays finite.
    ts = jnp.nan_to_num(ts_ref[...], posinf=BF16_MAX, neginf=-BF16_MAX).astype(bf16)
    stat = jnp.nan_to_num(stat_ref[...], posinf=BF16_MAX, neginf=-BF16_MAX).astype(bf16)

    # ---- raw branch: depthwise Conv1d + flatten + pointwise Linear, pre-folded
    # host-side into one (RAW_IN, CONV_OUT) bf16 matmul (mathematically identical).
    w_raw = wslab_ref[R_WRAW:R_WRAW + RAW_IN, :CONV_OUT]
    b_raw = bslab_ref[RB_RAW:RB_RAW + 1, :CONV_OUT]
    raw = jnp.maximum(
        jnp.dot(ts, w_raw, preferred_element_type=f32) + b_raw, 0.0)  # ReLU; Dropout(0.1)=id

    # ---- stat branch: Linear(NSI,512) -> ReLU -> Linear(512,NSO) -> ReLU,
    # chunked over HID_STAT so the full (TB,512) f32 h is never materialized+reloaded.
    s_acc = jnp.zeros((stat.shape[0], NSO), f32)
    for c in range(N_CHUNKS):                      # 4 static chunks of 128
        lo = c * CHUNK
        hc = jnp.dot(stat, ws1_ref[:, lo:lo + CHUNK], preferred_element_type=f32)
        hc = jnp.maximum(hc + bslab_ref[RB_S1:RB_S1 + 1, lo:lo + CHUNK], 0.0)  # Dropout(0.5)=id
        s_acc = s_acc + jnp.dot(hc.astype(bf16), ws2_ref[lo:lo + CHUNK, :],
                                preferred_element_type=f32)
    b_s2 = bslab_ref[RB_S2:RB_S2 + 1, :NSO]
    s = jnp.maximum(s_acc + b_s2, 0.0)                                         # Dropout(0.2)=id

    # ---- out head: concat([raw, stat]) @ W_o1  ==  raw @ W_o1[:16] + s @ W_o1[16:]
    w_o1r = wslab_ref[R_WO1R:R_WO1R + CONV_OUT, :HID_OUT]
    w_o1s = wslab_ref[R_WO1S:R_WO1S + NSO, :HID_OUT]
    b_o1 = bslab_ref[RB_O1:RB_O1 + 1, :HID_OUT]
    ho = jnp.maximum(
        jnp.dot(raw.astype(bf16), w_o1r, preferred_element_type=f32)
        + jnp.dot(s.astype(bf16), w_o1s, preferred_element_type=f32) + b_o1, 0.0)

    # W2/b2 are zero-padded to 128 lanes at pack time -> full-width unmasked store.
    w_o2 = wslab_ref[R_WO2:R_WO2 + HID_OUT, :OUT_PAD]
    b_o2 = bslab_ref[RB_O2:RB_O2 + 1, :OUT_PAD]
    # Final ReLU is part of the reference module's `out` head (nn.ReLU() last layer);
    # padded lanes are relu(0)=0, sliced off on the host.
    out_ref[...] = jnp.maximum(
        jnp.dot(ho.astype(bf16), w_o2, preferred_element_type=f32) + b_o2, 0.0)


# ---- wrapper ---------------------------------------------------------------
def classifier3_forward(ts, stat, packed, *, tile_b=512):
    """ts: (B, WINDOW, NI), stat: (B, NSI) -> (B, 8) float32.

    tile_b: preferred batch tile per grid step (default 512; 1024 also fits VMEM easily).
    The grid is always shaped to have an even number (>=2) of steps when B > 8 so the
    two v7x TensorCores both get work; v5e/v6e are unaffected by the extra split.
    """
    B = ts.shape[0]
    # Natural row-major flatten (no transpose): folded weight rows are pre-permuted.
    ts_flat = ts.astype(jnp.float32).reshape(B, RAW_IN)
    stat_f = stat.astype(jnp.float32)

    b8 = _round_up(B, 8)
    want = _round_up(max(8, int(tile_b)), 8)
    steps = max(1, -(-b8 // want))
    if b8 > 8:
        steps = _round_up(max(steps, 2), 2)        # >=2 and even: v7x megacore sharding
    tile = _round_up(-(-b8 // steps), 8)
    b_pad = tile * steps
    if b_pad != B:
        ts_flat = jnp.pad(ts_flat, ((0, b_pad - B), (0, 0)))
        stat_f = jnp.pad(stat_f, ((0, b_pad - B), (0, 0)))

    out = pl.pallas_call(
        classifier3_kernel,
        out_shape=jax.ShapeDtypeStruct((b_pad, OUT_PAD), jnp.float32),
        grid=(steps,),
        in_specs=[
            pl.BlockSpec((tile, RAW_IN), lambda i: (i, 0)),
            pl.BlockSpec((tile, NSI), lambda i: (i, 0)),
            # weights: constant block index -> DMA'd once, VMEM-resident over the grid
            pl.BlockSpec((NSI, HID_STAT), lambda i: (0, 0)),
            pl.BlockSpec((HID_STAT, NSO), lambda i: (0, 0)),
            pl.BlockSpec((W_SLAB_ROWS, OUT_PAD), lambda i: (0, 0)),
            pl.BlockSpec((B_SLAB_ROWS, HID_STAT), lambda i: (0, 0)),
        ],
        out_specs=pl.BlockSpec((tile, OUT_PAD), lambda i: (i, 0)),
        compiler_params=pltpu.CompilerParams(dimension_semantics=("parallel",)),
    )(ts_flat, stat_f, packed["w_s1"], packed["w_s2"], packed["w_slab"], packed["b_slab"])
    return out[:B, :N_OUT]


# ---- host-side (done once): fold conv->linear and pack params --------------
def _fold_raw_branch(w_dw, b_dw, w_pw_t, b_pw):
    """Fold depthwise Conv1d (+bias) followed by flatten + Linear into one affine map
    acting directly on the ROW-MAJOR flattened (window-major, channel-minor) unpadded
    input, i.e. ts.reshape(B, WINDOW*NI) — no per-call transpose needed."""
    # sel[k, j, l] = 1 iff unpadded input position j feeds conv output l via tap k
    sel = np.zeros((K, WINDOW, L_OUT), np.float32)
    for k in range(K):
        for l in range(L_OUT):
            j = l * STRIDE + k - PAD
            if 0 <= j < WINDOW:
                sel[k, j, l] = 1.0
    sel = jnp.asarray(sel)
    w_pw_c = w_pw_t.reshape(NI, L_OUT, CONV_OUT)                 # per-channel weight rows
    m = jnp.einsum('ck,kjl->cjl', w_dw, sel)                     # (NI, WINDOW, L_OUT)
    w_raw_cj = jnp.einsum('cjl,clo->cjo', m, w_pw_c)             # (NI, WINDOW, CONV_OUT)
    # permute rows to (window, channel) order -> matches ts.reshape(B, WINDOW*NI)
    w_raw = jnp.transpose(w_raw_cj, (1, 0, 2)).reshape(WINDOW * NI, CONV_OUT)
    b_raw = b_pw + jnp.einsum('c,clo->o', b_dw, w_pw_c)
    return w_raw, b_raw


def pack_params(p):
    w_raw, b_raw = _fold_raw_branch(p["w_dw"], p["b_dw"], p["w_pw_t"], p["b_pw"])

    wslab = jnp.zeros((W_SLAB_ROWS, OUT_PAD), jnp.float32)
    wslab = wslab.at[R_WRAW:R_WRAW + RAW_IN, :CONV_OUT].set(w_raw)
    wslab = wslab.at[R_WO1R:R_WO1R + CONV_OUT, :HID_OUT].set(p["w_o1"][:CONV_OUT])
    wslab = wslab.at[R_WO1S:R_WO1S + NSO, :HID_OUT].set(p["w_o1"][CONV_OUT:])
    wslab = wslab.at[R_WO2:R_WO2 + HID_OUT, :N_OUT].set(p["w_o2"])   # lanes 8..127 stay 0

    bslab = jnp.zeros((B_SLAB_ROWS, HID_STAT), jnp.float32)
    bslab = bslab.at[RB_S1, :HID_STAT].set(p["b_s1"])
    bslab = bslab.at[RB_RAW, :CONV_OUT].set(b_raw)
    bslab = bslab.at[RB_O1, :HID_OUT].set(p["b_o1"])
    bslab = bslab.at[RB_O2, :N_OUT].set(p["b_o2"])                   # lanes 8..127 stay 0
    bslab = bslab.at[RB_S2, :NSO].set(p["b_s2"])

    return {
        "w_s1": p["w_s1"].astype(jnp.bfloat16),                      # bf16 MXU operands
        "w_s2": p["w_s2"].astype(jnp.bfloat16),
        "w_slab": wslab.astype(jnp.bfloat16),
        "b_slab": bslab,                                             # biases stay f32
    }


# ---- deterministic parameter init (PyTorch-layout, weights stored transposed) ----
def init_params(key):
    ks = jax.random.split(key, 12)

    def lin(k, fan_in, shape):
        return (jax.random.normal(k, shape, jnp.float32) / jnp.sqrt(fan_in)).astype(jnp.float32)

    return {
        "w_dw": lin(ks[0], K, (NI, K)),                          # depthwise Conv1d weight
        "b_dw": lin(ks[1], K, (NI,)),                            # depthwise Conv1d bias
        "w_pw_t": lin(ks[2], CONV_OUT_SIZE, (CONV_OUT_SIZE, CONV_OUT)),  # pointwise W^T
        "b_pw": lin(ks[3], CONV_OUT_SIZE, (CONV_OUT,)),
        "w_s1": lin(ks[4], NSI, (NSI, HID_STAT)),
        "b_s1": lin(ks[5], NSI, (HID_STAT,)),
        "w_s2": lin(ks[6], HID_STAT, (HID_STAT, NSO)),
        "b_s2": lin(ks[7], HID_STAT, (NSO,)),
        "w_o1": lin(ks[8], CONV_OUT + NSO, (CONV_OUT + NSO, HID_OUT)),
        "b_o1": lin(ks[9], CONV_OUT + NSO, (HID_OUT,)),
        "w_o2": lin(ks[10], HID_OUT, (HID_OUT, N_OUT)),
        "b_o2": lin(ks[11], HID_OUT, (N_OUT,)),
    }


# ---- pure-JAX f32 reference (faithful to the PyTorch module, eval mode) -----
def reference_forward(ts, stat, p):
    B = ts.shape[0]
    raw = jnp.nan_to_num(jnp.transpose(ts.astype(jnp.float32), (0, 2, 1)))  # (B,NI,W)
    st = jnp.nan_to_num(stat.astype(jnp.float32))                            # (B,NSI)
    x = jnp.pad(raw, ((0, 0), (0, 0), (PAD, PAD)))
    y = sum(p["w_dw"][None, :, k:k + 1] * x[:, :, k:k + L_OUT] for k in range(K))
    y = y + p["b_dw"][None, :, None]                                         # (B,NI,L_OUT)
    r = jnp.maximum(y.reshape(B, -1) @ p["w_pw_t"] + p["b_pw"], 0.0)
    h = jnp.maximum(st @ p["w_s1"] + p["b_s1"], 0.0)
    s = jnp.maximum(h @ p["w_s2"] + p["b_s2"], 0.0)
    cat = jnp.concatenate([r, s], axis=1)
    ho = jnp.maximum(cat @ p["w_o1"] + p["b_o1"], 0.0)
    return jnp.maximum(ho @ p["w_o2"] + p["b_o2"], 0.0)


if __name__ == "__main__":
    key = jax.random.PRNGKey(0)
    k_p, k_ts, k_stat = jax.random.split(key, 3)

    raw_params = init_params(k_p)
    packed = pack_params(raw_params)

    B = 16                                                   # small demo batch
    ts = jax.random.normal(k_ts, (B, WINDOW, NI), jnp.float32)
    ts = ts.at[0, 3, 1].set(jnp.nan)                         # exercise nan_to_num
    ts = ts.at[7, 12, 2].set(jnp.nan)
    stat = jax.random.normal(k_stat, (B, NSI), jnp.float32)
    stat = stat.at[2, 5].set(jnp.nan)

    out = classifier3_forward(ts, stat, packed)
    out = jax.block_until_ready(out)
    assert out.shape == (B, N_OUT) and out.dtype == jnp.float32

    ref = reference_forward(ts, stat, raw_params)
    err = float(jnp.max(jnp.abs(out - ref)))
    assert err < 5e-2, f"max abs error vs reference too large: {err}"
    print("KERNEL_OK")
</pallas_src>

<mosaic_0001>
module attributes {stable_mosaic.version = 11 : i64} {
  func.func @classifier3_kernel(%arg0: i32, %arg1: memref<8x64xf32, #tpu.memory_space<vmem>>, %arg2: memref<8x32xf32, #tpu.memory_space<vmem>>, %arg3: memref<32x512xbf16, #tpu.memory_space<vmem>>, %arg4: memref<512x16xbf16, #tpu.memory_space<vmem>>, %arg5: memref<160x128xbf16, #tpu.memory_space<vmem>>, %arg6: memref<40x512xf32, #tpu.memory_space<vmem>>, %arg7: memref<8x128xf32, #tpu.memory_space<vmem>>) attributes {dimension_semantics = [#tpu.dimension_semantics<parallel>], iteration_bounds = array<i64: 2>, scalar_prefetch = 0 : i64, scratch_operands = 0 : i64, tpu.core_type = #tpu.core_type<tc>, window_params = [{transform_indices = @transform_0, window_bounds = array<i64: 8, 64>}, {transform_indices = @transform_1, window_bounds = array<i64: 8, 32>}, {pipeline_mode = #tpu.pipeline_mode<synchronous>, transform_indices = @transform_2, window_bounds = array<i64: 32, 512>}, {pipeline_mode = #tpu.pipeline_mode<synchronous>, transform_indices = @transform_3, window_bounds = array<i64: 512, 16>}, {pipeline_mode = #tpu.pipeline_mode<synchronous>, transform_indices = @transform_4, window_bounds = array<i64: 160, 128>}, {pipeline_mode = #tpu.pipeline_mode<synchronous>, transform_indices = @transform_5, window_bounds = array<i64: 40, 512>}, {transform_indices = @transform_6, window_bounds = array<i64: 8, 128>}]} {
    %c0 = arith.constant 0 : index
    %c0_0 = arith.constant 0 : index
    %0 = vector.load %arg1[%c0, %c0_0] : memref<8x64xf32, #tpu.memory_space<vmem>>, vector<8x64xf32>
    %cst = arith.constant -3.38953139E+38 : f32
    %cst_1 = arith.constant 3.38953139E+38 : f32
    %1 = arith.cmpf one, %0, %0 : vector<8x64xf32>
    %cst_2 = arith.constant 0.000000e+00 : f32
    %2 = vector.broadcast %cst_2 : f32 to vector<8x64xf32>
    %3 = arith.select %1, %2, %0 : vector<8x64xi1>, vector<8x64xf32>
    %cst_3 = arith.constant 0x7F800000 : f32
    %4 = vector.broadcast %cst_3 : f32 to vector<8x64xf32>
    %5 = arith.cmpf oeq, %3, %4 : vector<8x64xf32>
    %6 = vector.broadcast %cst_1 : f32 to vector<8x64xf32>
    %7 = arith.select %5, %6, %3 : vector<8x64xi1>, vector<8x64xf32>
    %cst_4 = arith.constant 0xFF800000 : f32
    %8 = vector.broadcast %cst_4 : f32 to vector<8x64xf32>
    %9 = arith.cmpf oeq, %7, %8 : vector<8x64xf32>
    %10 = vector.broadcast %cst : f32 to vector<8x64xf32>
    %11 = arith.select %9, %10, %7 : vector<8x64xi1>, vector<8x64xf32>
    %12 = arith.truncf %11 : vector<8x64xf32> to vector<8x64xbf16>
    %c0_5 = arith.constant 0 : index
    %c0_6 = arith.constant 0 : index
    %13 = vector.load %arg2[%c0_5, %c0_6] : memref<8x32xf32, #tpu.memory_space<vmem>>, vector<8x32xf32>
    %cst_7 = arith.constant -3.38953139E+38 : f32
    %cst_8 = arith.constant 3.38953139E+38 : f32
    %14 = arith.cmpf one, %13, %13 : vector<8x32xf32>
    %cst_9 = arith.constant 0.000000e+00 : f32
    %15 = vector.broadcast %cst_9 : f32 to vector<8x32xf32>
    %16 = arith.select %14, %15, %13 : vector<8x32xi1>, vector<8x32xf32>
    %cst_10 = arith.constant 0x7F800000 : f32
    %17 = vector.broadcast %cst_10 : f32 to vector<8x32xf32>
    %18 = arith.cmpf oeq, %16, %17 : vector<8x32xf32>
    %19 = vector.broadcast %cst_8 : f32 to vector<8x32xf32>
    %20 = arith.select %18, %19, %16 : vector<8x32xi1>, vector<8x32xf32>
    %cst_11 = arith.constant 0xFF800000 : f32
    %21 = vector.broadcast %cst_11 : f32 to vector<8x32xf32>
    %22 = arith.cmpf oeq, %20, %21 : vector<8x32xf32>
    %23 = vector.broadcast %cst_7 : f32 to vector<8x32xf32>
    %24 = arith.select %22, %23, %20 : vector<8x32xi1>, vector<8x32xf32>
    %25 = arith.truncf %24 : vector<8x32xf32> to vector<8x32xbf16>
    %c0_12 = arith.constant 0 : index
    %c0_13 = arith.constant 0 : index
    %26 = vector.load %arg5[%c0_12, %c0_13] : memref<160x128xbf16, #tpu.memory_space<vmem>>, vector<64x16xbf16>
    %c8 = arith.constant 8 : index
    %c0_14 = arith.constant 0 : index
    %27 = vector.load %arg6[%c8, %c0_14] : memref<40x512xf32, #tpu.memory_space<vmem>>, vector<1x16xf32>
    %cst_15 = arith.constant dense<0.000000e+00> : vector<8x16xf32>
    %28 = tpu.matmul %12, %26, %cst_15 {dimension_numbers = #tpu.dot_dimension_numbers<[1], [0], [0], [1], [0, 0, 1, 1], [], []>} : vector<8x64xbf16>, vector<64x16xbf16>, vector<8x16xf32> -> vector<8x16xf32>
    %29 = vector.broadcast %27 : vector<1x16xf32> to vector<8x16xf32>
    %30 = arith.addf %28, %29 : vector<8x16xf32>
    %cst_16 = arith.constant 0.000000e+00 : f32
    %31 = vector.broadcast %cst_16 : f32 to vector<8x16xf32>
    %32 = arith.maximumf %30, %31 : vector<8x16xf32>
    %cst_17 = arith.constant 0.000000e+00 : f32
    %33 = vector.broadcast %cst_17 : f32 to vector<8x16xf32>
    %c0_18 = arith.constant 0 : index
    %c0_19 = arith.constant 0 : index
    %34 = vector.load %arg3[%c0_18, %c0_19] : memref<32x512xbf16, #tpu.memory_space<vmem>>, vector<32x128xbf16>
    %cst_20 = arith.constant dense<0.000000e+00> : vector<8x128xf32>
    %35 = tpu.matmul %25, %34, %cst_20 {dimension_numbers = #tpu.dot_dimension_numbers<[1], [0], [0], [1], [0, 0, 1, 1], [], []>} : vector<8x32xbf16>, vector<32x128xbf16>, vector<8x128xf32> -> vector<8x128xf32>
    %c0_21 = arith.constant 0 : index
    %c0_22 = arith.constant 0 : index
    %36 = vector.load %arg6[%c0_21, %c0_22] : memref<40x512xf32, #tpu.memory_space<vmem>>, vector<1x128xf32>
    %37 = vector.broadcast %36 : vector<1x128xf32> to vector<8x128xf32>
    %38 = arith.addf %35, %37 : vector<8x128xf32>
    %cst_23 = arith.constant 0.000000e+00 : f32
    %39 = vector.broadcast %cst_23 : f32 to vector<8x128xf32>
    %40 = arith.maximumf %38, %39 : vector<8x128xf32>
    %41 = arith.truncf %40 : vector<8x128xf32> to vector<8x128xbf16>
    %c0_24 = arith.constant 0 : index
    %c0_25 = arith.constant 0 : index
    %42 = vector.load %arg4[%c0_24, %c0_25] : memref<512x16xbf16, #tpu.memory_space<vmem>>, vector<128x16xbf16>
    %cst_26 = arith.constant dense<0.000000e+00> : vector<8x16xf32>
    %43 = tpu.matmul %41, %42, %cst_26 {dimension_numbers = #tpu.dot_dimension_numbers<[1], [0], [0], [1], [0, 0, 1, 1], [], []>} : vector<8x128xbf16>, vector<128x16xbf16>, vector<8x16xf32> -> vector<8x16xf32>
    %44 = arith.addf %33, %43 : vector<8x16xf32>
    %c0_27 = arith.constant 0 : index
    %c128 = arith.constant 128 : index
    %45 = vector.load %arg3[%c0_27, %c128] : memref<32x512xbf16, #tpu.memory_space<vmem>>, vector<32x128xbf16>
    %cst_28 = arith.constant dense<0.000000e+00> : vector<8x128xf32>
    %46 = tpu.matmul %25, %45, %cst_28 {dimension_numbers = #tpu.dot_dimension_numbers<[1], [0], [0], [1], [0, 0, 1, 1], [], []>} : vector<8x32xbf16>, vector<32x128xbf16>, vector<8x128xf32> -> vector<8x128xf32>
    %c0_29 = arith.constant 0 : index
    %c128_30 = arith.constant 128 : index
    %47 = vector.load %arg6[%c0_29, %c128_30] : memref<40x512xf32, #tpu.memory_space<vmem>>, vector<1x128xf32>
    %48 = vector.broadcast %47 : vector<1x128xf32> to vector<8x128xf32>
    %49 = arith.addf %46, %48 : vector<8x128xf32>
    %cst_31 = arith.constant 0.000000e+00 : f32
    %50 = vector.broadcast %cst_31 : f32 to vector<8x128xf32>
    %51 = arith.maximumf %49, %50 : vector<8x128xf32>
    %52 = arith.truncf %51 : vector<8x128xf32> to vector<8x128xbf16>
    %c128_32 = arith.constant 128 : index
    %c0_33 = arith.constant 0 : index
    %53 = vector.load %arg4[%c128_32, %c0_33] : memref<512x16xbf16, #tpu.memory_space<vmem>>, vector<128x16xbf16>
    %cst_34 = arith.constant dense<0.000000e+00> : vector<8x16xf32>
    %54 = tpu.matmul %52, %53, %cst_34 {dimension_numbers = #tpu.dot_dimension_numbers<[1], [0], [0], [1], [0, 0, 1, 1], [], []>} : vector<8x128xbf16>, vector<128x16xbf16>, vector<8x16xf32> -> vector<8x16xf32>
    %55 = arith.addf %44, %54 : vector<8x16xf32>
    %c0_35 = arith.constant 0 : index
    %c256 = arith.constant 256 : index
    %56 = vector.load %arg3[%c0_35, %c256] : memref<32x512xbf16, #tpu.memory_space<vmem>>, vector<32x128xbf16>
    %cst_36 = arith.constant dense<0.000000e+00> : vector<8x128xf32>
    %57 = tpu.matmul %25, %56, %cst_36 {dimension_numbers = #tpu.dot_dimension_numbers<[1], [0], [0], [1], [0, 0, 1, 1], [], []>} : vector<8x32xbf16>, vector<32x128xbf16>, vector<8x128xf32> -> vector<8x128xf32>
    %c0_37 = arith.constant 0 : index
    %c256_38 = arith.constant 256 : index
    %58 = vector.load %arg6[%c0_37, %c256_38] : memref<40x512xf32, #tpu.memory_space<vmem>>, vector<1x128xf32>
    %59 = vector.broadcast %58 : vector<1x128xf32> to vector<8x128xf32>
    %60 = arith.addf %57, %59 : vector<8x128xf32>
    %cst_39 = arith.constant 0.000000e+00 : f32
    %61 = vector.broadcast %cst_39 : f32 to vector<8x128xf32>
    %62 = arith.maximumf %60, %61 : vector<8x128xf32>
    %63 = arith.truncf %62 : vector<8x128xf32> to vector<8x128xbf16>
    %c256_40 = arith.constant 256 : index
    %c0_41 = arith.constant 0 : index
    %64 = vector.load %arg4[%c256_40, %c0_41] : memref<512x16xbf16, #tpu.memory_space<vmem>>, vector<128x16xbf16>
    %cst_42 = arith.constant dense<0.000000e+00> : vector<8x16xf32>
    %65 = tpu.matmul %63, %64, %cst_42 {dimension_numbers = #tpu.dot_dimension_numbers<[1], [0], [0], [1], [0, 0, 1, 1], [], []>} : vector<8x128xbf16>, vector<128x16xbf16>, vector<8x16xf32> -> vector<8x16xf32>
    %66 = arith.addf %55, %65 : vector<8x16xf32>
    %c0_43 = arith.constant 0 : index
    %c384 = arith.constant 384 : index
    %67 = vector.load %arg3[%c0_43, %c384] : memref<32x512xbf16, #tpu.memory_space<vmem>>, vector<32x128xbf16>
    %cst_44 = arith.constant dense<0.000000e+00> : vector<8x128xf32>
    %68 = tpu.matmul %25, %67, %cst_44 {dimension_numbers = #tpu.dot_dimension_numbers<[1], [0], [0], [1], [0, 0, 1, 1], [], []>} : vector<8x32xbf16>, vector<32x128xbf16>, vector<8x128xf32> -> vector<8x128xf32>
    %c0_45 = arith.constant 0 : index
    %c384_46 = arith.constant 384 : index
    %69 = vector.load %arg6[%c0_45, %c384_46] : memref<40x512xf32, #tpu.memory_space<vmem>>, vector<1x128xf32>
    %70 = vector.broadcast %69 : vector<1x128xf32> to vector<8x128xf32>
    %71 = arith.addf %68, %70 : vector<8x128xf32>
    %cst_47 = arith.constant 0.000000e+00 : f32
    %72 = vector.broadcast %cst_47 : f32 to vector<8x128xf32>
    %73 = arith.maximumf %71, %72 : vector<8x128xf32>
    %74 = arith.truncf %73 : vector<8x128xf32> to vector<8x128xbf16>
    %c384_48 = arith.constant 384 : index
    %c0_49 = arith.constant 0 : index
    %75 = vector.load %arg4[%c384_48, %c0_49] : memref<512x16xbf16, #tpu.memory_space<vmem>>, vector<128x16xbf16>
    %cst_50 = arith.constant dense<0.000000e+00> : vector<8x16xf32>
    %76 = tpu.matmul %74, %75, %cst_50 {dimension_numbers = #tpu.dot_dimension_numbers<[1], [0], [0], [1], [0, 0, 1, 1], [], []>} : vector<8x128xbf16>, vector<128x16xbf16>, vector<8x16xf32> -> vector<8x16xf32>
    %77 = arith.addf %66, %76 : vector<8x16xf32>
    %c32 = arith.constant 32 : index
    %c0_51 = arith.constant 0 : index
    %78 = vector.load %arg6[%c32, %c0_51] : memref<40x512xf32, #tpu.memory_space<vmem>>, vector<1x16xf32>
    %79 = vector.broadcast %78 : vector<1x16xf32> to vector<8x16xf32>
    %80 = arith.addf %77, %79 : vector<8x16xf32>
    %cst_52 = arith.constant 0.000000e+00 : f32
    %81 = vector.broadcast %cst_52 : f32 to vector<8x16xf32>
    %82 = arith.maximumf %80, %81 : vector<8x16xf32>
    %c64 = arith.constant 64 : index
    %c0_53 = arith.constant 0 : index
    %83 = vector.load %arg5[%c64, %c0_53] : memref<160x128xbf16, #tpu.memory_space<vmem>>, vector<16x64xbf16>
    %c80 = arith.constant 80 : index
    %c0_54 = arith.constant 0 : index
    %84 = vector.load %arg5[%c80, %c0_54] : memref<160x128xbf16, #tpu.memory_space<vmem>>, vector<16x64xbf16>
    %c16 = arith.constant 16 : index
    %c0_55 = arith.constant 0 : index
    %85 = vector.load %arg6[%c16, %c0_55] : memref<40x512xf32, #tpu.memory_space<vmem>>, vector<1x64xf32>
    %86 = arith.truncf %32 : vector<8x16xf32> to vector<8x16xbf16>
    %cst_56 = arith.constant dense<0.000000e+00> : vector<8x64xf32>
    %87 = tpu.matmul %86, %83, %cst_56 {dimension_numbers = #tpu.dot_dimension_numbers<[1], [0], [0], [1], [0, 0, 1, 1], [], []>} : vector<8x16xbf16>, vector<16x64xbf16>, vector<8x64xf32> -> vector<8x64xf32>
    %88 = arith.truncf %82 : vector<8x16xf32> to vector<8x16xbf16>
    %cst_57 = arith.constant dense<0.000000e+00> : vector<8x64xf32>
    %89 = tpu.matmul %88, %84, %cst_57 {dimension_numbers = #tpu.dot_dimension_numbers<[1], [0], [0], [1], [0, 0, 1, 1], [], []>} : vector<8x16xbf16>, vector<16x64xbf16>, vector<8x64xf32> -> vector<8x64xf32>
    %90 = arith.addf %87, %89 : vector<8x64xf32>
    %91 = vector.broadcast %85 : vector<1x64xf32> to vector<8x64xf32>
    %92 = arith.addf %90, %91 : vector<8x64xf32>
    %cst_58 = arith.constant 0.000000e+00 : f32
    %93 = vector.broadcast %cst_58 : f32 to vector<8x64xf32>
    %94 = arith.maximumf %92, %93 : vector<8x64xf32>
    %c96 = arith.constant 96 : index
    %c0_59 = arith.constant 0 : index
    %95 = vector.load %arg5[%c96, %c0_59] : memref<160x128xbf16, #tpu.memory_space<vmem>>, vector<64x128xbf16>
    %c24 = arith.constant 24 : index
    %c0_60 = arith.constant 0 : index
    %96 = vector.load %arg6[%c24, %c0_60] : memref<40x512xf32, #tpu.memory_space<vmem>>, vector<1x128xf32>
    %97 = arith.truncf %94 : vector<8x64xf32> to vector<8x64xbf16>
    %cst_61 = arith.constant dense<0.000000e+00> : vector<8x128xf32>
    %98 = tpu.matmul %97, %95, %cst_61 {dimension_numbers = #tpu.dot_dimension_numbers<[1], [0], [0], [1], [0, 0, 1, 1], [], []>} : vector<8x64xbf16>, vector<64x128xbf16>, vector<8x128xf32> -> vector<8x128xf32>
    %99 = vector.broadcast %96 : vector<1x128xf32> to vector<8x128xf32>
    %100 = arith.addf %98, %99 : vector<8x128xf32>
    %cst_62 = arith.constant 0.000000e+00 : f32
    %101 = vector.broadcast %cst_62 : f32 to vector<8x128xf32>
    %102 = arith.maximumf %100, %101 : vector<8x128xf32>
    %c0_63 = arith.constant 0 : index
    %c0_64 = arith.constant 0 : index
    %103 = vector.load %arg7[%c0_63, %c0_64] : memref<8x128xf32, #tpu.memory_space<vmem>>, vector<8x128xf32>
    tpu.vector_store %arg7[%c0_63, %c0_64], %102 {strides = array<i32>} : memref<8x128xf32, #tpu.memory_space<vmem>>, vector<8x128xf32>,
    return
  }
  func.func @transform_0(%arg0: i32) -> (i32, i32) {
    %c0_i32 = arith.constant 0 : i32
    %c0_i32_0 = arith.constant 0 : i32
    return %arg0, %c0_i32 : i32, i32
  }
  func.func @transform_1(%arg0: i32) -> (i32, i32) {
    %c0_i32 = arith.constant 0 : i32
    %c0_i32_0 = arith.constant 0 : i32
    return %arg0, %c0_i32 : i32, i32
  }
  func.func @transform_2(%arg0: i32) -> (i32, i32) {
    %c0_i32 = arith.constant 0 : i32
    %c0_i32_0 = arith.constant 0 : i32
    %c0_i32_1 = arith.constant 0 : i32
    return %c0_i32, %c0_i32_0 : i32, i32
  }
  func.func @transform_3(%arg0: i32) -> (i32, i32) {
    %c0_i32 = arith.constant 0 : i32
    %c0_i32_0 = arith.constant 0 : i32
    %c0_i32_1 = arith.constant 0 : i32
    return %c0_i32, %c0_i32_0 : i32, i32
  }
  func.func @transform_4(%arg0: i32) -> (i32, i32) {
    %c0_i32 = arith.constant 0 : i32
    %c0_i32_0 = arith.constant 0 : i32
    %c0_i32_1 = arith.constant 0 : i32
    return %c0_i32, %c0_i32_0 : i32, i32
  }
  func.func @transform_5(%arg0: i32) -> (i32, i32) {
    %c0_i32 = arith.constant 0 : i32
    %c0_i32_0 = arith.constant 0 : i32
    %c0_i32_1 = arith.constant 0 : i32
    return %c0_i32, %c0_i32_0 : i32, i32
  }
  func.func @transform_6(%arg0: i32) -> (i32, i32) {
    %c0_i32 = arith.constant 0 : i32
    %c0_i32_0 = arith.constant 0 : i32
    return %arg0, %c0_i32 : i32, i32
  }
}

</mosaic_0001>

<bundles_post_ra>
// kernel: tpu_custom_call.1
= control target key start
LH: loop header
LB: loop body
LE: loop exit
PB: predicated region body
PF: predicated region fallthrough
CT: control target
= control target key end

     0   :  { %11 = vsyncpa [#allocation3], 0  ;;  %s2196_s0 = inlined_call_operand.vmem [shape: f32[16,64], index: 0, kind: input, shape index: {}]   ;;  %s2197_s1 = inlined_call_operand.vmem [shape: f32[16,32], index: 1, kind: input, shape index: {}]   ;;  %s2198_s2 = inlined_call_operand.hbm [shape: bf16[32,512], index: 2, kind: input, shape index: {}]   ;;  %s2199_s3 = inlined_call_operand.vmem [shape: bf16[512,16], index: 3, kind: input, shape index: {}]   ;;  %s2200_s4 = inlined_call_operand.vmem [shape: bf16[160,128], index: 4, kind: input, shape index: {}]   ;;  %s2201_s5 = inlined_call_operand.vmem [shape: f32[40,512], index: 5, kind: input, shape index: {}]   ;;  %s2202_s6 = inlined_call_operand.hbm [shape: f32[16,128], index: 6, kind: output, shape index: {}]  }
   0x1   :  { %12 = vsyncpa [#allocation4], 0 }
   0x2   :  { %14 = vsyncpa [#allocation4 + $0x1], 0  ;;  %s1837_s21 = smov 0   ;;  %s1839_s22 = smov 0  }
   0x3   :  { %s1841_s23 = smov 0   ;;  %s1843_s24 = smov 0  }
   0x4 LB: > { %s1858_s25 = sadd.s32 4294967295, %s1794_s24   ;;  %s1319_s26 = sadd.s32 4294967294, %s1794_s24   ;;  %s1794_s24 = sphi %s1843_s24, %s2210_s24   ;;  %s1790_s23 = sphi %s1841_s23, %s2209_s23   ;;  %s1786_s22 = sphi %s1839_s22, %s2208_s22   ;;  %s1782_s21 = sphi %s1837_s21, %s2207_s21  }
   0x5   : > { %s1862_s27 = sadd.s32 1, %s1794_s24   ;;  %s163_s28 = sadd.s32 1, %s1790_s23 }
   0x6   : > { %s160_s29 = ssub.s32 %s1794_s24, %s1862_s27  ;;  %p173_p0 = scmp.ne.s32.totalorder %s1790_s23, %s1786_s22 }
   0x7   : > { %p161_p1 = scmp.eq.s32.totalorder %s160_s29, 0  ;;  %p174_p2 = scmp.eq.s32.totalorder %s1858_s25, 1 }
   0x8   : > { %p179_p3 = scmp.ne.s32.totalorder %s1786_s22, %s1782_s21  ;;  %p180_p4 = scmp.eq.s32.totalorder %s1319_s26, 1 }
   0x9   : > { %s1873_s30 = scalar_select %p161_p1, %s1790_s23, %s163_s28  }
   0xa   : > { %p1875_p5 = por %p174_p2, %p173_p0  ;;  %p1879_p6 = por %p180_p4, %p179_p3 }
   0xb   : > { %p1320_p7 = scmp.ge.s32.totalorder %s1794_s24, 1  ;;  %p187_p8 = scmp.lt.s32.totalorder %s1794_s24, 3 }
   0xc   : > { %s2204_s8 = scalar_select %p1879_p6, 1, 0 }
   0xd   : > { %p1614_p9 = scmp.eq.s32.totalorder %s1858_s25, 0  ;;  %p1886_p10 = pnand %p1320_p7, %p187_p8 }
   0xe   : > { %s1796_s10 = smov [#allocation2]  }
   0xf   : > { %s199_s11 = sshll.u32 %s1796_s10, 4  ;;  %p1606_p11 = pneg %p1886_p10  ;;  %s200_s11 = int_to_ptr.vmem [resolvable:$true] %s199_s11 }
  0x10   : > { %s1715_s12 = scalar_lea.vmem %s200_s11, 1024  ;;  %p1723_p3 = scmp.lt.s32.totalorder %s200_s11, %s200_s11 }
  0x11   : > { %p1607_p12 = pnand %p1614_p9, %p1606_p11  ;;  %p1716_p0 = scmp.ne.s32.totalorder %s200_s11, %s1715_s12 }
  0x12   : > { %p1724_p4 = scmp.lt.s32.totalorder %s1715_s12, %s1715_s12 }
  0x13   : > { %p1706_p13 = pneg %p1607_p12 }
  0x14   : > { %p1725_p6 = por %p1724_p4, %p1723_p3 }
  0x15   : > { %p1718_p1 = pnand %p1716_p0, %p1706_p13 }
  0x17   : > { %p1719_p2 = pneg %p1718_p1 }
  0x19   : > { %p1726_p7 = pnand %p1725_p6, %p1719_p2 }
  0x1b   : > { %1729 = shalt.err (!%p1726_p7)
}
  0x1c   : > { %s1797_s13 = smov 256   ;;  %s1798_s14 = smov 16  }
  0x1d   : > { %1609 = dma.hbm_to_vmem [thread:$0]  (!%p1607_p12), %s2198_s2, 1024, %s200_s11, [#allocation3], %s1797_s13, %s1797_s13, %s1798_s14  }
  0x1e   : > { %238 = sbr.rel (%p1886_p10) target bundleno = 1086 (0x43e), region = 44 }
  0x23   : > { %1773 = dma.done.wait (%p1614_p9), [#allocation3], 1024  }
  0x24   : > { %1775 = vsyncadd (%p1614_p9), [#allocation3], 4294966272  ;;  %p271_p8 = scmp.lt.s32.totalorder %s1858_s25, 1  ;;  %v1799_v0 = vmov 0.0   ;;  %vm1800_vm0 = vmmov 0   ;;  %v1658_v5 = vld [vmem:[%s2200_s4 + $0x18] sm:$0xff]  }
  0x25   : > { %1464 = vmatprep.subr.bf16.mxu1 %v1799_v0  ;;  %1468 = vmatprep.mubr.msk.bf16.mxu1 %vm1800_vm0, %v1799_v0  ;;  %v1654_v1 = vld [vmem:[#allocation2 + $0x20] ss:$16 sps:$4 sm:$0xff]   ;;  %v1656_v7 = vld [vmem:[#allocation2 + $0x24] ss:$16 sps:$4 sm:$0xff]   ;;  %vm391_vm4 = vcmask 261120   ;;  %v1660_v13 = vld [vmem:[%s2200_s4 + $0x8] sm:$0xff]  }
  0x26   : > { %s272_s17 = scalar_select %p271_p8, %s1858_s25, 1  ;;  %1452 = vmatprep.subr.bf16.mxu0 %v1799_v0  ;;  %1460 = vmatprep.mubr.msk.bf16.mxu0 %vm1800_vm0, %v1799_v0  ;;  %v1655_v2 = vld [vmem:[#allocation2] ss:$16 sps:$4 sm:$0xff]   ;;  %v1657_v12 = vld [vmem:[#allocation2 + $0x4] ss:$16 sps:$4 sm:$0xff]   ;;  %v1662_v18 = vld [vmem:[%s2199_s3 + $0x38] sm:$0xff]  }
  0x27   : > { %1465 = vmatpush3.bf16.msra.mxu1 %v1654_v1  ;;  %1453 = vmatpush3.bf16.msra.mxu0 %v1658_v5  ;;  %v1659_v8 = vld [vmem:[%s2200_s4 + $0x10] sm:$0xff]   ;;  %v1661_v16 = vld [vmem:[%s2200_s4] sm:$0xff]   ;;  %vm329_vm8 = vcmask 523264   ;;  %v1664_v21 = vld [vmem:[%s2199_s3 + $0x78] sm:$0xff]   ;;  %vm1048_vm9 = vcmask 130048   ;;  %s1387_s28 = sshll.u32 %s1858_s25, 7 }
  0x28   : > { %s1326_s18 = sshll.u32 %s272_s17, 3  ;;  %1466 = vmatprep.subr.bf16.mxu1 %v1799_v0  ;;  %1454 = vmatprep.subr.bf16.mxu0 %v1799_v0  ;;  %v1663_v20 = vld [vmem:[%s2199_s3 + $0x30] sm:$0xff]   ;;  %v1665_v23 = vld [vmem:[%s2199_s3 + $0x28] sm:$0xff]   ;;  %v1667_v25 = vld [vmem:[%s2199_s3 + $0x20] sm:$0xff]   ;;  %s2155_s12 = scalar_lea.hbm %s2202_s6, %s1387_s28 }
  0x29   : > { %s278_s26 = scalar_lea.vmem %s2197_s1, %s1326_s18  ;;  %s274_s13 = scalar_lea.vmem %s2196_s0, %s1326_s18  ;;  %v1666_v22 = vld [vmem:[%s2199_s3 + $0x70] sm:$0xff]   ;;  %v1668_v24 = vld [vmem:[%s2199_s3 + $0x68] sm:$0xff]   ;;  %v1670_v26 = vld [vmem:[%s2199_s3 + $0x60] sm:$0xff]  }
  0x2a   : > { %v288_v3 = vld [vmem:[%s278_s26] sm:$0xff]  ;;  %v1669_v27 = vld [vmem:[%s2199_s3 + $0x18] sm:$0xff]   ;;  %v1671_v28 = vld [vmem:[%s2199_s3 + $0x10] sm:$0xff]   ;;  %s268_s18 = sand.u32 1, %s1786_s22   ;;  %s1801_s14 = smov [#allocation5]  }
  0x2b   : > { %vm289_vm1 = vcmp.ne.f32.partialorder %v288_v3, %v288_v3  ;;  %1467 = vmatpush3.bf16.msra.mxu1 %v1655_v2  ;;  %v280_v11 = vld [vmem:[%s274_s13] sm:$0xff]  ;;  %1455 = vmatpush3.bf16.msra.mxu0 %v1659_v8  ;;  %v1672_v29 = vld [vmem:[%s2199_s3 + $0x58] sm:$0xff]   ;;  %v1673_v30 = vld [vmem:[%s2199_s3 + $0x8] sm:$0xff]   ;;  %s1325_s19 = sshll.u32 %s268_s18, 3  ;;  %s1223_s13 = scalar_lea.sflag [#allocation4], %s268_s18 }
  0x2c   : > { %v290_v4 = vsel %vm289_vm1, 0.0, %v288_v3  ;;  %1472 = vmatprep.subr.bf16.mxu1 %v1799_v0  ;;  %vm281_vm5 = vcmp.ne.f32.partialorder %v280_v11, %v280_v11  ;;  %1456 = vmatprep.subr.bf16.mxu0 %v1799_v0  ;;  %v1674_v31 = vld [vmem:[%s2199_s3 + $0x50] sm:$0xff]   ;;  %v1675_v32 = vld [vmem:[%s2199_s3] sm:$0xff]   ;;  %v1676_v33 = vld [vmem:[%s2199_s3 + $0x48] sm:$0xff]   ;;  %s270_s29 = scalar_lea.vmem [#allocation5], %s1325_s19  ;;  %s1734_s15 = sshll.u32 %s1801_s14, 4  ;;  %s1735_s15 = int_to_ptr.vmem [resolvable:$false] %s1734_s15 }
  0x2d   : > { %vm291_vm2 = vcmp.eq.f32.partialorder %v290_v4, inf  ;;  %v282_v14 = vsel %vm281_vm5, 0.0, %v280_v11  ;;  %v1678_v34 = vld [vmem:[%s2199_s3 + $0x40] sm:$0xff]   ;;  %v1677_v41 = vld [vmem:[#allocation2 + $0x28] ss:$16 sps:$4 sm:$0xff]   ;;  %v1683_v60 = vld [vmem:[%s2199_s3 + $0xb0] sm:$0xff]  }
  0x2e   : > { %v292_v6 = vsel %vm291_vm2, 3.3895314e+38, %v290_v4  ;;  %vm283_vm6 = vcmp.eq.f32.partialorder %v282_v14, inf  ;;  %v378_v35 = vld [vmem:[%s2201_s5] ss:$0 sm:$0xff]  ;;  %v457_v44 = vld [vmem:[%s2201_s5 + $0x8] ss:$0 sm:$0xff] }
  0x2f   : > { %vm293_vm3 = vcmp.eq.f32.partialorder %v292_v6, -inf  ;;  %v284_v15 = vsel %vm283_vm6, 3.3895314e+38, %v282_v14  ;;  %1457 = vmatpush3.bf16.msra.mxu0 %v1660_v13  ;;  %v1679_v46 = vld [vmem:[#allocation2 + $0x8] ss:$16 sps:$4 sm:$0xff]   ;;  %v1680_v52 = vld [vmem:[#allocation2 + $0x2c] ss:$16 sps:$4 sm:$0xff]  }
  0x30   : > { %v294_v9 = vsel %vm293_vm3, -3.3895314e+38, %v292_v6  ;;  %vm285_vm7 = vcmp.eq.f32.partialorder %v284_v15, -inf  ;;  %1458 = vmatprep.subr.bf16.mxu0 %v1799_v0  ;;  %v1682_v55 = vld [vmem:[%s2199_s3 + $0xb8] sm:$0xff]   ;;  %v1684_v62 = vld [vmem:[%s2199_s3 + $0xa8] sm:$0xff]   ;;  %v1687_v63 = vld [vmem:[%s2199_s3 + $0xf0] sm:$0xff]   ;;  %s1236_s9 = sshll.u32 %s270_s29, 4  ;;  %s2157_s9 = int_to_ptr.vmem [resolvable:$true] %s1236_s9 }
  0x31   : > { %v1926_v10 = vpack.c.bf16 %v294_v9, %v294_v9  ;;  %v286_v17 = vsel %vm285_vm7, -3.3895314e+38, %v284_v15  ;;  %v1681_v58 = vld [vmem:[#allocation2 + $0xc] ss:$16 sps:$4 sm:$0xff]   ;;  %v1686_v1 = vld [vmem:[%s2199_s3 + $0xa0] sm:$0xff]   ;;  %v1690_v4 = vld [vmem:[%s2199_s3 + $0x90] sm:$0xff]   ;;  %s1730_s25 = scalar_lea.vmem %s2157_s9, 128  ;;  %p1737_p11 = scmp.lt.s32.totalorder %s2157_s9, %s1735_s15 }
  0x32   : > { %v287_v19 = vpack.c.bf16 %v286_v17, %v286_v17  ;;  %v1685_v61 = vld [vmem:[%s2199_s3 + $0xf8] sm:$0xff]   ;;  %v1689_v3 = vld [vmem:[%s2199_s3 + $0xe8] sm:$0xff]   ;;  %v1691_v5 = vld [vmem:[%s2199_s3 + $0xe0] sm:$0xff]   ;;  %p1731_p6 = scmp.ne.s32.totalorder %s2157_s9, %s1730_s25  ;;  %s1736_s16 = scalar_lea.vmem %s1735_s15, 256 }
  0x33   : > { %1469 = vmatmul.mubr.msk.bf16.vlgmr.msra.gmra.mxu1 %vm391_vm4, %v1926_v10  ;;  %1459 = vmatpush3.bf16.msra.mxu0 %v1661_v16  ;;  %v1688_v2 = vld [vmem:[%s2199_s3 + $0x98] sm:$0xff]   ;;  %v1692_v6 = vld [vmem:[%s2199_s3 + $0x88] sm:$0xff]   ;;  %v1694_v8 = vld [vmem:[%s2199_s3 + $0x80] sm:$0xff]   ;;  %p1738_p12 = scmp.lt.s32.totalorder %s1736_s16, %s1730_s25 }
  0x34   : > { %1473 = vmatpush3.bf16.msra.mxu1 %v1656_v7  ;;  %1476 = vmatprep.mubr.msk.bf16.mxu1 %vm1800_vm0, %v1799_v0  ;;  %v1693_v7 = vld [vmem:[%s2199_s3 + $0xd8] sm:$0xff]   ;;  %v1695_v9 = vld [vmem:[%s2199_s3 + $0xd0] sm:$0xff]   ;;  %v1697_v11 = vld [vmem:[%s2199_s3 + $0xc0] sm:$0xff]   ;;  %p1732_p9 = pnand %p1731_p6, %p1875_p5 }
  0x35   : > { %1474 = vmatprep.subr.bf16.mxu1 %v1799_v0  ;;  %1480 = vmatprep.subr.bf16.mxu0 %v1799_v0  ;;  %v708_v16 = vld [vmem:[%s2201_s5 + $0x10] ss:$0 sm:$0xff]  ;;  %p1739_p13 = por %p1738_p12, %p1737_p11 }
  0x36   : > { %1461 = vmatmul.mubr.msk.bf16.vlgmr.msra.gmra.mxu0 %vm329_vm8, %v287_v19  ;;  %p1733_p10 = pneg %p1732_p9 }
  0x37   : > { %1481 = vmatpush3.bf16.msra.mxu0 %v1664_v21  ;;  %1496 = vmatprep.mubr.msk.bf16.mxu0 %vm1800_vm0, %v1799_v0 }
  0x38   : > { %1475 = vmatpush3.bf16.msra.mxu1 %v1657_v12  ;;  %1482 = vmatprep.subr.bf16.mxu0 %v1799_v0  ;;  %p1740_p0 = pnand %p1739_p13, %p1733_p10 }
  0x39   : > { %1500 = vmatprep.subr.bf16.mxu1 %v1799_v0 }
  0x3b   : > { %1477 = vmatmul.mubr.msk.bf16.vlgmr.msra.gmra.mxu1 %vm391_vm4, %v1926_v10  ;;  %1483 = vmatpush3.bf16.msra.mxu0 %v1666_v22 }
  0x3c   : > { %1501 = vmatpush3.bf16.msra.mxu1 %v1662_v18  ;;  %1516 = vmatprep.mubr.msk.bf16.mxu1 %vm1800_vm0, %v1799_v0 }
  0x3d   : > { %1502 = vmatprep.subr.bf16.mxu1 %v1799_v0  ;;  %1484 = vmatprep.subr.bf16.mxu0 %v1799_v0 }
  0x3f   : > { %1485 = vmatpush3.bf16.msra.mxu0 %v1668_v24 }
  0x40   : > { %1503 = vmatpush3.bf16.msra.mxu1 %v1663_v20  ;;  %1486 = vmatprep.subr.bf16.mxu0 %v1799_v0 }
  0x41   : > { %1504 = vmatprep.subr.bf16.mxu1 %v1799_v0 }
  0x43   : > { %1487 = vmatpush3.bf16.msra.mxu0 %v1670_v26 }
  0x44   : > { %1505 = vmatpush3.bf16.msra.mxu1 %v1665_v23  ;;  %1488 = vmatprep.subr.bf16.mxu0 %v1799_v0 }
  0x45   : > { %1506 = vmatprep.subr.bf16.mxu1 %v1799_v0 }
  0x47   : > { %1489 = vmatpush3.bf16.msra.mxu0 %v1672_v29  ;;  %v872_v29 = vld [vmem:[%s2201_s5 + $0x18] ss:$0 sm:$0xff] }
  0x48   : > { %1507 = vmatpush3.bf16.msra.mxu1 %v1667_v25  ;;  %1490 = vmatprep.subr.bf16.mxu0 %v1799_v0 }
  0x49   : > { %1508 = vmatprep.subr.bf16.mxu1 %v1799_v0 }
  0x4b   : > { %1491 = vmatpush3.bf16.msra.mxu0 %v1674_v31 }
  0x4c   : > { %1509 = vmatpush3.bf16.msra.mxu1 %v1669_v27  ;;  %1492 = vmatprep.subr.bf16.mxu0 %v1799_v0 }
  0x4d   : > { %1510 = vmatprep.subr.bf16.mxu1 %v1799_v0 }
  0x4f   : > { %1493 = vmatpush3.bf16.msra.mxu0 %v1676_v33 }
  0x50   : > { %1511 = vmatpush3.bf16.msra.mxu1 %v1671_v28  ;;  %1494 = vmatprep.subr.bf16.mxu0 %v1799_v0 }
  0x51   : > { %1512 = vmatprep.subr.bf16.mxu1 %v1799_v0 }
  0x53   : > { %1495 = vmatpush3.bf16.msra.mxu0 %v1678_v34 }
  0x54   : > { %1513 = vmatpush3.bf16.msra.mxu1 %v1673_v30  ;;  %1548 = vmatprep.subr.bf16.mxu0 %v1799_v0 }
  0x55   : > { %1514 = vmatprep.subr.bf16.mxu1 %v1799_v0 }
  0x58   : > { %1515 = vmatpush3.bf16.msra.mxu1 %v1675_v32 }
  0x59   : > { %1520 = vmatprep.subr.bf16.mxu1 %v1799_v0 }
  0xf3   : > { %v429_v36 = vpop.f32.mrf.mxu1 }
  0xf4   : > { %v430_v37 = vadd.f32 %v429_v36, %v378_v35 }
  0xf5   : > { %v1470_v38 = vpop.f32.mrf.mxu1 }
  0xf6   : > { %v435_v39 = vmax.f32 %v430_v37, 0.0  ;;  %v2023_v49 = vpop.f32.mrf.mxu0  ;;  %v1698_v37 = vld [vmem:[%s2200_s4 + $0x28] sm:$0xff]  }
  0xf7   : > { %v432_v40 = vpop.f32.mrf.mxu1 }
  0xf8   : > { %v436_v42 = vpack.c.bf16 %v435_v39, %v435_v39  ;;  %v1462_v53 = vpop.f32.mrf.mxu0 }
  0xf9   : > { %v1471_v43 = vpop.f32.mrf.mxu1  ;;  %v1699_v53 = vld [vmem:[%s2200_s4 + $0x20] sm:$0xff]  }
  0xfa   : > { %1517 = vmatmul.mubr.bf16.vlgmr.msra.gmra.mxu1 %v436_v42  ;;  %v370_v57 = vpop.f32.mrf.mxu0 }
  0xfb   : > { %v504_v45 = vpop.f32.mrf.mxu1  ;;  %1521 = vmatpush3.bf16.msra.mxu1 %v1677_v41  ;;  %1524 = vmatprep.mubr.msk.bf16.mxu1 %vm1800_vm0, %v1799_v0 }
  0xfc   : > { %v505_v47 = vadd.f32 %v504_v45, %v457_v44  ;;  %1522 = vmatprep.subr.bf16.mxu1 %v1799_v0  ;;  %v1463_v59 = vpop.f32.mrf.mxu0  ;;  %v1032_v44 = vld [vmem:[%s2201_s5 + $0x80] ss:$0 sm:$0xff] }
  0xfd   : > { %v1478_v48 = vpop.f32.mrf.mxu1  ;;  %v1702_v59 = vld [vmem:[%s2200_s4 + $0x38] sm:$0xff]  }
  0xfe   : > { %v510_v50 = vmax.f32 %v505_v47, 0.0  ;;  %v304_v48 = vld [vmem:[%s2201_s5 + $0x20] ss:$0 sm:$0xff] }
  0xff   : > { %v507_v51 = vpop.f32.mrf.mxu1  ;;  %1523 = vmatpush3.bf16.msra.mxu1 %v1679_v46 }
 0x100   : > { %v511_v54 = vpack.c.bf16 %v510_v50, %v510_v50  ;;  %1528 = vmatprep.subr.bf16.mxu1 %v1799_v0 }
 0x101   : > { %v1479_v56 = vpop.f32.mrf.mxu1 }
 0x102   : > { %1497 = vmatmul.mubr.bf16.vlgmr.msra.gmra.mxu0 %v511_v54  ;;  %1525 = vmatmul.mubr.msk.bf16.vlgmr.msra.gmra.mxu1 %vm391_vm4, %v1926_v10  ;;  %v368_v54 = vadd.f32 %v2023_v49, %v304_v48  ;;  %v1701_v49 = vld [vmem:[%s2200_s4 + $0x40] sm:$0xff]  }
 0x103   : > { %1549 = vmatpush3.bf16.msra.mxu0 %v1680_v52  ;;  %1552 = vmatprep.mubr.msk.bf16.mxu0 %vm1800_vm0, %v1799_v0 }
 0x104   : > { %1550 = vmatprep.subr.bf16.mxu0 %v1799_v0  ;;  %1529 = vmatpush3.bf16.msra.mxu1 %v1682_v55  ;;  %v373_v56 = vmax.f32 %v368_v54, 0.0 }
 0x105   : > { %1530 = vmatprep.subr.bf16.mxu1 %v1799_v0  ;;  %1544 = vmatprep.mubr.msk.bf16.mxu1 %vm1800_vm0, %v1799_v0 }
 0x106   : > { %v1040_v57 = vpack.c.bf16 %v373_v56, %v373_v56 }
 0x107   : > { %1551 = vmatpush3.bf16.msra.mxu0 %v1681_v58  ;;  %v1700_v58 = vld [vmem:[%s2200_s4 + $0x48] sm:$0xff]  }
 0x108   : > { %1531 = vmatpush3.bf16.msra.mxu1 %v1683_v60  ;;  %1556 = vmatprep.subr.bf16.mxu0 %v1799_v0  ;;  %v1703_v60 = vld [vmem:[%s2200_s4 + $0x30] sm:$0xff]  }
 0x109   : > { %1532 = vmatprep.subr.bf16.mxu1 %v1799_v0 }
 0x10a   : > { %1553 = vmatmul.mubr.msk.bf16.vlgmr.msra.gmra.mxu0 %vm391_vm4, %v1926_v10  ;;  %v1696_v10 = vld [vmem:[%s2199_s3 + $0xc8] sm:$0xff]  }
 0x10b   : > { %1557 = vmatpush3.bf16.msra.mxu0 %v1685_v61  ;;  %1572 = vmatprep.mubr.msk.bf16.mxu0 %vm1800_vm0, %v1799_v0 }
 0x10c   : > { %1533 = vmatpush3.bf16.msra.mxu1 %v1684_v62  ;;  %1558 = vmatprep.subr.bf16.mxu0 %v1799_v0 }
 0x10d   : > { %1534 = vmatprep.subr.bf16.mxu1 %v1799_v0 }
 0x10f   : > { %1559 = vmatpush3.bf16.msra.mxu0 %v1687_v63 }
 0x110   : > { %1535 = vmatpush3.bf16.msra.mxu1 %v1686_v1  ;;  %1560 = vmatprep.subr.bf16.mxu0 %v1799_v0 }
 0x111   : > { %1536 = vmatprep.subr.bf16.mxu1 %v1799_v0 }
 0x113   : > { %1561 = vmatpush3.bf16.msra.mxu0 %v1689_v3 }
 0x114   : > { %1537 = vmatpush3.bf16.msra.mxu1 %v1688_v2  ;;  %1562 = vmatprep.subr.bf16.mxu0 %v1799_v0  ;;  %v1039_v2 = vld [vmem:[%s2201_s5 + $0x40] ss:$0 sm:$0xff] }
 0x115   : > { %1538 = vmatprep.subr.bf16.mxu1 %v1799_v0 }
 0x117   : > { %1563 = vmatpush3.bf16.msra.mxu0 %v1691_v5 }
 0x118   : > { %1539 = vmatpush3.bf16.msra.mxu1 %v1690_v4  ;;  %1564 = vmatprep.subr.bf16.mxu0 %v1799_v0 }
 0x119   : > { %1540 = vmatprep.subr.bf16.mxu1 %v1799_v0 }
 0x11b   : > { %1565 = vmatpush3.bf16.msra.mxu0 %v1693_v7 }
 0x11c   : > { %1541 = vmatpush3.bf16.msra.mxu1 %v1692_v6  ;;  %1566 = vmatprep.subr.bf16.mxu0 %v1799_v0 }
 0x11d   : > { %1542 = vmatprep.subr.bf16.mxu1 %v1799_v0 }
 0x11f   : > { %1567 = vmatpush3.bf16.msra.mxu0 %v1695_v9 }
 0x120   : > { %1543 = vmatpush3.bf16.msra.mxu1 %v1694_v8  ;;  %1568 = vmatprep.subr.bf16.mxu0 %v1799_v0 }
 0x121   : > { %1576 = vmatprep.subr.bf16.mxu1 %v1799_v0 }
 0x123   : > { %1569 = vmatpush3.bf16.msra.mxu0 %v1696_v10  ;;  %v1151_v10 = vld [vmem:[%s2201_s5 + $0x60] ss:$0 sm:$0xff] }
 0x124   : > { %1570 = vmatprep.subr.bf16.mxu0 %v1799_v0 }
 0x127   : > { %1571 = vmatpush3.bf16.msra.mxu0 %v1697_v11 }
 0x128   : > { %1588 = vmatprep.subr.bf16.mxu0 %v1799_v0 }
 0x1ba   : > { %v698_v12 = vpop.f32.mrf.mxu1 }
 0x1bc   : > { %v1518_v13 = vpop.f32.mrf.mxu1 }
 0x1be   : > { %v701_v14 = vpop.f32.mrf.mxu1 }
 0x1c0   : > { %v1519_v15 = vpop.f32.mrf.mxu1 }
 0x1c2   : > { %v610_v17 = vpop.f32.mrf.mxu0  ;;  %v755_v18 = vpop.f32.mrf.mxu1 }
 0x1c3   : > { %v699_v19 = vadd.f32 %v698_v12, %v610_v17  ;;  %v756_v20 = vadd.f32 %v755_v18, %v708_v16 }
 0x1c4   : > { %v1498_v21 = vpop.f32.mrf.mxu0  ;;  %v1526_v22 = vpop.f32.mrf.mxu1 }
 0x1c5   : > { %v761_v23 = vmax.f32 %v756_v20, 0.0 }
 0x1c6   : > { %v613_v24 = vpop.f32.mrf.mxu0  ;;  %v758_v25 = vpop.f32.mrf.mxu1 }
 0x1c7   : > { %v762_v26 = vpack.c.bf16 %v761_v23, %v761_v23 }
 0x1c8   : > { %v1499_v27 = vpop.f32.mrf.mxu0  ;;  %v1527_v28 = vpop.f32.mrf.mxu1 }
 0x1c9   : > { %1545 = vmatmul.mubr.bf16.vlgmr.msra.gmra.mxu1 %v762_v26 }
 0x1ca   : > { %v919_v30 = vpop.f32.mrf.mxu0  ;;  %1578 = vmatprep.mubr.msk.bf16.mxu1 %vm1800_vm0, %v1799_v0  ;;  %1577 = vmatpush3.bf16.msra.mxu1 %v1698_v37 }
 0x1cb   : > { %v920_v31 = vadd.f32 %v919_v30, %v872_v29  ;;  %1582 = vmatprep.subr.bf16.mxu1 %v1799_v0 }
 0x1cc   : > { %v1554_v32 = vpop.f32.mrf.mxu0 }
 0x1cd   : > { %v925_v33 = vmax.f32 %v920_v31, 0.0 }
 0x1ce   : > { %v922_v34 = vpop.f32.mrf.mxu0 }
 0x1cf   : > { %v926_v35 = vpack.c.bf16 %v925_v33, %v925_v33 }
 0x1d0   : > { %v1555_v36 = vpop.f32.mrf.mxu0 }
 0x1d1   : > { %1573 = vmatmul.mubr.bf16.vlgmr.msra.gmra.mxu0 %v926_v35 }
 0x1d2   : > { %1596 = vmatprep.mubr.msk.bf16.mxu0 %vm1800_vm0, %v1799_v0  ;;  %1589 = vmatpush3.bf16.msra.mxu0 %v1700_v58 }
 0x1d3   : > { %1590 = vmatprep.subr.bf16.mxu0 %v1799_v0 }
 0x1d6   : > { %1591 = vmatpush3.bf16.msra.mxu0 %v1701_v49 }
 0x1d7   : > { %1592 = vmatprep.subr.bf16.mxu0 %v1799_v0 }
 0x1da   : > { %1593 = vmatpush3.bf16.msra.mxu0 %v1702_v59 }
 0x1db   : > { %1594 = vmatprep.subr.bf16.mxu0 %v1799_v0 }
 0x1de   : > { %1595 = vmatpush3.bf16.msra.mxu0 %v1703_v60 }
 0x289   : > { %v861_v38 = vpop.f32.mrf.mxu1 }
 0x28a   : > { %v867_v42 = vadd.f32 %v861_v38, %v699_v19 }
 0x28b   : > { %v1546_v39 = vpop.f32.mrf.mxu1 }
 0x28d   : > { %v864_v40 = vpop.f32.mrf.mxu1 }
 0x28f   : > { %v1547_v41 = vpop.f32.mrf.mxu1 }
 0x291   : > { %v1025_v43 = vpop.f32.mrf.mxu0 }
 0x292   : > { %v1031_v45 = vadd.f32 %v1025_v43, %v867_v42 }
 0x293   : > { %v1574_v46 = vpop.f32.mrf.mxu0 }
 0x294   : > { %v1033_v47 = vadd.f32 %v1032_v44, %v1031_v45 }
 0x295   : > { %v1028_v50 = vpop.f32.mrf.mxu0 }
 0x296   : > { %v1034_v51 = vmax.f32 %v1033_v47, 0.0 }
 0x297   : > { %v1575_v52 = vpop.f32.mrf.mxu0 }
 0x298   : > { %v1041_v55 = vpack.c.bf16 %v1034_v51, %v1034_v51 }
 0x29a   : > { %1579 = vmatmul.mubr.msk.bf16.vlgmr.msra.gmra.mxu1 %vm1048_vm9, %v1041_v55 }
 0x29b   : > { %1583 = vmatpush3.bf16.msra.mxu1 %v1699_v53  ;;  %1584 = vmatprep.mubr.msk.bf16.mxu1 %vm1800_vm0, %v1799_v0 }
 0x2a2   : > { %1585 = vmatmul.mubr.msk.bf16.vlgmr.msra.gmra.mxu1 %vm1048_vm9, %v1040_v57 }
 0x35a   : > { %v1086_v61 = vpop.f32.mrf.mxu1 }
 0x35c   : > { %v1580_v62 = vpop.f32.mrf.mxu1 }
 0x35e   : > { %v1089_v63 = vpop.f32.mrf.mxu1 }
 0x360   : > { %v1581_v1 = vpop.f32.mrf.mxu1 }
 0x362   : > { %v1135_v3 = vpop.f32.mrf.mxu1 }
 0x363   : > { %v1136_v4 = vadd.f32 %v1135_v3, %v1086_v61 }
 0x364   : > { %v1586_v5 = vpop.f32.mrf.mxu1 }
 0x365   : > { %v1141_v6 = vadd.f32 %v1136_v4, %v1039_v2 }
 0x366   : > { %v1138_v0 = vpop.f32.mrf.mxu1 }
 0x367   : > { %v1142_v7 = vmax.f32 %v1141_v6, 0.0 }
 0x368   : > { %v1587_v8 = vpop.f32.mrf.mxu1 }
 0x369   : > { %v1152_v9 = vpack.c.bf16 %v1142_v7, %v1142_v7 }
 0x36b   : > { %1597 = vmatmul.mubr.msk.bf16.vlgmr.msra.gmra.mxu0 %vm329_vm8, %v1152_v9 }
 0x42b   : > { %v1214_v11 = vpop.f32.mrf.mxu0 }
 0x42c   : > { %v1215_v12 = vadd.f32 %v1214_v11, %v1151_v10 }
 0x42d   : > { %v1598_v13 = vpop.f32.mrf.mxu0 }
 0x42e   : > { %v1220_v14 = vmax.f32 %v1215_v12, 0.0 }
 0x42f   : > { %v1217_v15 = vpop.f32.mrf.mxu0 }
 0x430   : > { %1221 = vst [vmem:[%s270_s29] sm:$0xff] %v1220_v14 }
 0x431   : > { %v1599_v16 = vpop.f32.mrf.mxu0 }
 0x432   : > { %1743 = shalt.err (!%p1740_p0)
}
 0x433   : > { %s1744_s17 = scalar_lea.hbm %s2155_s12, 128  ;;  %s1748_s20 = scalar_lea.hbm %s2202_s6, 256 }
 0x434   : > { %p1745_p1 = scmp.ne.s32.totalorder %s2155_s12, %s1744_s17  ;;  %p1749_p4 = scmp.lt.s32.totalorder %s2155_s12, %s2202_s6 }
 0x435   : > { %p1750_p7 = scmp.lt.s32.totalorder %s1748_s20, %s1744_s17 }
 0x436   : > { %p1746_p2 = pnand %p1745_p1, %p1875_p5 }
 0x437   : > { %p1751_p8 = por %p1750_p7, %p1749_p4 }
 0x438   : > { %p1747_p3 = pneg %p1746_p2 }
 0x43a   : > { %p1752_p6 = pnand %p1751_p8, %p1747_p3 }
 0x43c   : > { %1755 = shalt.err (!%p1752_p6)
}
 0x43d   : > { %1604 = dma.vmem_to_hbm [thread:$0]  (%p1875_p5), %s2157_s9, 128, %s2155_s12, %s1223_s13  }
 0x43e PF: > { %p1616_p9 = scmp.ge.s32.totalorder %s1794_s24, 2  ;;  %s1248_s29 = sand.u32 1, %s1782_s21  }
 0x43f   : > { %p2206_p10 = scmp.ne.s32.totalorder %s2204_s8, 0  ;;  %s1249_s10 = scalar_lea.sflag [#allocation4], %s1248_s29 }
 0x441   : > { %p1611_p11 = pnand %p1616_p9, %p2206_p10 }
 0x443   : > { %p1612_p12 = pneg %p1611_p11 }
 0x445   : > { %1777 = dma.done.wait (%p1612_p12), %s1249_s10, 128  }
 0x446   : > { %1779 = vsyncadd (%p1612_p12), %s1249_s10, 4294967168  ;;  %p17_p13 = scmp.ge.s32.totalorder %s1862_s27, 4   ;;  %s2207_s21 = smov %s1786_s22 }
 0x447   : > { %s2208_s22 = smov %s1790_s23  ;;  %s2209_s23 = smov %s1873_s30 }
 0x448   : > { %s2210_s24 = smov %s1862_s27  ;;  %19 = sbr.rel (!%p17_p13) target bundleno = 4 (0x4), region = 87 }
 0x44d   :  { %1254 = vsyncpa [#allocation3], 1 }
 0x44e   :  { %1256 = vsyncpa [#allocation3 + $0x1], 1 }
 0x44f   :  { %1257 = vsyncpa [#allocation4], 1 }
 0x450   :  { %1259 = vsyncpa [#allocation4 + $0x1], 1 }

</bundles_post_ra>
